<compile_context>
chip_gen: v7x
topology: tpu7x:2x2x1
jax: 0.10.0
libtpu: 0.0.40
codegen_flags: <defaults>
</compile_context>

<pallas_src>
import jax
import jax.numpy as jnp
from jax import lax
from jax.experimental import pallas as pl
from jax.experimental.pallas import tpu as pltpu


def _cdiv(a, b):
    return -(-a // b)


# ----------------------------------------------------------------------------
# Kernel
# ----------------------------------------------------------------------------
def _make_sse_kernel(C, TR, chunk_rows, unroll_channels):
    """Fused sSE body for one (1, C, TR, 128) block.

    w_ref            : SMEM (C,) f32 conv weights.
    x_ref / out_ref  : VMEM (1, C, TR, 128) input / output tiles.
    """

    def kernel(w_ref, x_ref, out_ref):
        out_dtype = out_ref.dtype

        # Process the block in small row-chunks so the f32 gate intermediate
        # stays a handful of vregs even when the DMA block is MiB-sized.
        for r0 in range(0, TR, chunk_rows):
            r1 = min(r0 + chunk_rows, TR)
            rs = slice(r0, r1)

            # ---- 1x1 conv over channels: per-pixel MACs on the VPU ----------
            if unroll_channels:
                q = x_ref[0, 0, rs, :].astype(jnp.float32) * w_ref[0]
                for c in range(1, C):
                    q = q + x_ref[0, c, rs, :].astype(jnp.float32) * w_ref[c]
            else:
                q0 = x_ref[0, 0, rs, :].astype(jnp.float32) * w_ref[0]

                def acc_body(c, q):
                    xc = x_ref[0, pl.ds(c, 1), rs, :][0].astype(jnp.float32)
                    return q + xc * w_ref[c]

                q = lax.fori_loop(1, C, acc_body, q0, unroll=4)

            # ---- sigmoid gate (exp runs on the EUP slot) --------------------
            gate = 1.0 / (1.0 + jnp.exp(-q))
            # Cast once: f32 inputs gate in f32, bf16 inputs gate in bf16.
            gate = gate.astype(out_dtype)

            # ---- apply the spatial gate to every channel --------------------
            if unroll_channels:
                for c in range(C):
                    out_ref[0, c, rs, :] = (
                        x_ref[0, c, rs, :].astype(out_dtype) * gate)
            else:
                def gate_body(c, carry):
                    xc = x_ref[0, pl.ds(c, 1), rs, :][0].astype(out_dtype)
                    out_ref[0, pl.ds(c, 1), rs, :] = (xc * gate)[None]
                    return carry

                lax.fori_loop(0, C, gate_body, 0, unroll=4)

    return kernel


# ----------------------------------------------------------------------------
# Tiling
# ----------------------------------------------------------------------------
def _spatial_tile(C, S, itemsize, budget_bytes=2 * 1024 * 1024, max_rows=1024):
    """Pick rows-of-128-pixels per block for the flattened spatial axis.

    Returns (TR, padded_S, n_spatial_tiles).  TR is a multiple of the sublane
    packing granule (8 for 4-byte, 16 for 2-byte, 32 for 1-byte dtypes) unless
    a single tile covers the whole (padded) spatial extent, in which case the
    block dim equals the full array dim (allowed by the (8,128) rule).
    """
    gran = max(8, 32 // itemsize)
    per_row_bytes = C * 128 * itemsize
    tr = (budget_bytes // per_row_bytes) // gran * gran
    tr = max(gran, min(max_rows, tr))

    R = _cdiv(S, 128)
    if R <= tr:
        return R, R * 128, 1
    n_tiles = _cdiv(R, tr)
    return tr, n_tiles * tr * 128, n_tiles


# ----------------------------------------------------------------------------
# Wrapper
# ----------------------------------------------------------------------------
def sse(U, conv_w):
    """sSE forward.

    U:      (N, C, H, W)  input feature map (NCHW, like the PyTorch module).
    conv_w: (1, C, 1, 1)  Conv2d(C, 1, kernel_size=1, bias=False) weight (OIHW).
    Returns (N, C, H, W).
    """
    N, C, H, W = U.shape
    assert conv_w.shape == (1, C, 1, 1)

    S = H * W
    itemsize = jnp.dtype(U.dtype).itemsize
    TR, Sp, n_spatial_tiles = _spatial_tile(C, S, itemsize)
    R_pad = Sp // 128

    # Flatten spatial dims (free, contiguous) and make the lane dim dense.
    x = U.reshape(N, C, S)
    if Sp != S:
        x = jnp.pad(x, ((0, 0), (0, 0), (0, Sp - S)))
    x = x.reshape(N, C, R_pad, 128)

    w = conv_w.reshape(C).astype(jnp.float32)

    chunk_rows = min(TR, 64)                      # bounds in-kernel intermediates
    kernel = _make_sse_kernel(C, TR, chunk_rows, unroll_channels=(C <= 32))

    out = pl.pallas_call(
        kernel,
        out_shape=jax.ShapeDtypeStruct((N, C, R_pad, 128), U.dtype),
        grid_spec=pltpu.PrefetchScalarGridSpec(
            num_scalar_prefetch=0,
            grid=(N, n_spatial_tiles),
            in_specs=[
                # tiny per-channel weights -> SMEM (scalar path, constant window)
                pl.BlockSpec(memory_space=pltpu.MemorySpace.SMEM),
                pl.BlockSpec((1, C, TR, 128), lambda n, s: (n, 0, s, 0)),
            ],
            out_specs=pl.BlockSpec((1, C, TR, 128), lambda n, s: (n, 0, s, 0)),
        ),
        compiler_params=pltpu.CompilerParams(
            dimension_semantics=("parallel", "parallel")),
    )(w, x)

    out = out.reshape(N, C, Sp)
    if Sp != S:
        out = out[:, :, :S]
    return out.reshape(N, C, H, W)


# ----------------------------------------------------------------------------
# Reference & test
# ----------------------------------------------------------------------------
def _reference(U, conv_w):
    """Pure-JAX reference for the sSE forward pass."""
    q = jax.lax.conv_general_dilated(
        U, conv_w, window_strides=(1, 1), padding="VALID",
        dimension_numbers=("NCHW", "OIHW", "NCHW"))
    q = jax.nn.sigmoid(q)
    return U * q


if __name__ == "__main__":
    key = jax.random.PRNGKey(0)
    k_u, k_w = jax.random.split(key)

    # sSE(in_channels=4) on a (2, 4, 16, 16) feature map
    N, C, H, W = 2, 4, 16, 16
    U = jax.random.normal(k_u, (N, C, H, W), jnp.float32)
    conv_w = jax.random.normal(k_w, (1, C, 1, 1), jnp.float32) * 0.5

    out = sse(U, conv_w)
    out = jax.block_until_ready(out)

    ref = _reference(U, conv_w)
    assert out.shape == (N, C, H, W)
    assert jnp.allclose(out, ref, atol=1e-5, rtol=1e-4), "mismatch vs reference"

    print("KERNEL_OK")
</pallas_src>

<mosaic_0001>
module attributes {stable_mosaic.version = 11 : i64} {
  func.func @kernel(%arg0: i32, %arg1: i32, %arg2: memref<4xf32, #tpu.memory_space<smem>>, %arg3: memref<1x4x2x128xf32, #tpu.memory_space<vmem>>, %arg4: memref<1x4x2x128xf32, #tpu.memory_space<vmem>>) attributes {dimension_semantics = [#tpu.dimension_semantics<parallel>, #tpu.dimension_semantics<parallel>], iteration_bounds = array<i64: 2, 1>, scalar_prefetch = 0 : i64, scratch_operands = 0 : i64, tpu.core_type = #tpu.core_type<tc>, window_params = [{transform_indices = @transform_0, window_bounds = array<i64: 4>}, {transform_indices = @transform_1, window_bounds = array<i64: 1, 4, 2, 128>}, {transform_indices = @transform_2, window_bounds = array<i64: 1, 4, 2, 128>}]} {
    %c0 = arith.constant 0 : index
    %c0_0 = arith.constant 0 : index
    %c0_1 = arith.constant 0 : index
    %c0_2 = arith.constant 0 : index
    %0 = vector.load %arg3[%c0, %c0_0, %c0_1, %c0_2] : memref<1x4x2x128xf32, #tpu.memory_space<vmem>>, vector<1x1x2x128xf32>
    %1 = vector.shape_cast %0 : vector<1x1x2x128xf32> to vector<2x128xf32>
    %c0_3 = arith.constant 0 : index
    %2 = memref.load %arg2[%c0_3] : memref<4xf32, #tpu.memory_space<smem>>
    %3 = vector.broadcast %2 : f32 to vector<2x128xf32>
    %4 = arith.mulf %1, %3 : vector<2x128xf32>
    %c0_4 = arith.constant 0 : index
    %c1 = arith.constant 1 : index
    %c0_5 = arith.constant 0 : index
    %c0_6 = arith.constant 0 : index
    %5 = vector.load %arg3[%c0_4, %c1, %c0_5, %c0_6] : memref<1x4x2x128xf32, #tpu.memory_space<vmem>>, vector<1x1x2x128xf32>
    %6 = vector.shape_cast %5 : vector<1x1x2x128xf32> to vector<2x128xf32>
    %c1_7 = arith.constant 1 : index
    %7 = memref.load %arg2[%c1_7] : memref<4xf32, #tpu.memory_space<smem>>
    %8 = vector.broadcast %7 : f32 to vector<2x128xf32>
    %9 = arith.mulf %6, %8 : vector<2x128xf32>
    %10 = arith.addf %4, %9 : vector<2x128xf32>
    %c0_8 = arith.constant 0 : index
    %c2 = arith.constant 2 : index
    %c0_9 = arith.constant 0 : index
    %c0_10 = arith.constant 0 : index
    %11 = vector.load %arg3[%c0_8, %c2, %c0_9, %c0_10] : memref<1x4x2x128xf32, #tpu.memory_space<vmem>>, vector<1x1x2x128xf32>
    %12 = vector.shape_cast %11 : vector<1x1x2x128xf32> to vector<2x128xf32>
    %c2_11 = arith.constant 2 : index
    %13 = memref.load %arg2[%c2_11] : memref<4xf32, #tpu.memory_space<smem>>
    %14 = vector.broadcast %13 : f32 to vector<2x128xf32>
    %15 = arith.mulf %12, %14 : vector<2x128xf32>
    %16 = arith.addf %10, %15 : vector<2x128xf32>
    %c0_12 = arith.constant 0 : index
    %c3 = arith.constant 3 : index
    %c0_13 = arith.constant 0 : index
    %c0_14 = arith.constant 0 : index
    %17 = vector.load %arg3[%c0_12, %c3, %c0_13, %c0_14] : memref<1x4x2x128xf32, #tpu.memory_space<vmem>>, vector<1x1x2x128xf32>
    %18 = vector.shape_cast %17 : vector<1x1x2x128xf32> to vector<2x128xf32>
    %c3_15 = arith.constant 3 : index
    %19 = memref.load %arg2[%c3_15] : memref<4xf32, #tpu.memory_space<smem>>
    %20 = vector.broadcast %19 : f32 to vector<2x128xf32>
    %21 = arith.mulf %18, %20 : vector<2x128xf32>
    %22 = arith.addf %16, %21 : vector<2x128xf32>
    %cst = arith.constant 0.000000e+00 : f32
    %23 = vector.broadcast %cst : f32 to vector<2x128xf32>
    %24 = arith.subf %23, %22 : vector<2x128xf32>
    %25 = math.exp %24 : vector<2x128xf32>
    %cst_16 = arith.constant 1.000000e+00 : f32
    %26 = vector.broadcast %cst_16 : f32 to vector<2x128xf32>
    %27 = arith.addf %26, %25 : vector<2x128xf32>
    %cst_17 = arith.constant 1.000000e+00 : f32
    %28 = vector.broadcast %cst_17 : f32 to vector<2x128xf32>
    %29 = arith.divf %28, %27 : vector<2x128xf32>
    %c0_18 = arith.constant 0 : index
    %c0_19 = arith.constant 0 : index
    %c0_20 = arith.constant 0 : index
    %c0_21 = arith.constant 0 : index
    %30 = vector.load %arg3[%c0_18, %c0_19, %c0_20, %c0_21] : memref<1x4x2x128xf32, #tpu.memory_space<vmem>>, vector<1x1x2x128xf32>
    %31 = vector.shape_cast %30 : vector<1x1x2x128xf32> to vector<2x128xf32>
    %32 = arith.mulf %31, %29 : vector<2x128xf32>
    %c0_22 = arith.constant 0 : index
    %c0_23 = arith.constant 0 : index
    %c0_24 = arith.constant 0 : index
    %c0_25 = arith.constant 0 : index
    %33 = vector.load %arg4[%c0_22, %c0_23, %c0_24, %c0_25] : memref<1x4x2x128xf32, #tpu.memory_space<vmem>>, vector<1x1x2x128xf32>
    %34 = vector.shape_cast %33 : vector<1x1x2x128xf32> to vector<2x128xf32>
    %35 = vector.shape_cast %32 : vector<2x128xf32> to vector<1x1x2x128xf32>
    tpu.vector_store %arg4[%c0_22, %c0_23, %c0_24, %c0_25], %35 {strides = array<i32>} : memref<1x4x2x128xf32, #tpu.memory_space<vmem>>, vector<1x1x2x128xf32>,
    %c0_26 = arith.constant 0 : index
    %c1_27 = arith.constant 1 : index
    %c0_28 = arith.constant 0 : index
    %c0_29 = arith.constant 0 : index
    %36 = vector.load %arg3[%c0_26, %c1_27, %c0_28, %c0_29] : memref<1x4x2x128xf32, #tpu.memory_space<vmem>>, vector<1x1x2x128xf32>
    %37 = vector.shape_cast %36 : vector<1x1x2x128xf32> to vector<2x128xf32>
    %38 = arith.mulf %37, %29 : vector<2x128xf32>
    %c0_30 = arith.constant 0 : index
    %c1_31 = arith.constant 1 : index
    %c0_32 = arith.constant 0 : index
    %c0_33 = arith.constant 0 : index
    %39 = vector.load %arg4[%c0_30, %c1_31, %c0_32, %c0_33] : memref<1x4x2x128xf32, #tpu.memory_space<vmem>>, vector<1x1x2x128xf32>
    %40 = vector.shape_cast %39 : vector<1x1x2x128xf32> to vector<2x128xf32>
    %41 = vector.shape_cast %38 : vector<2x128xf32> to vector<1x1x2x128xf32>
    tpu.vector_store %arg4[%c0_30, %c1_31, %c0_32, %c0_33], %41 {strides = array<i32>} : memref<1x4x2x128xf32, #tpu.memory_space<vmem>>, vector<1x1x2x128xf32>,
    %c0_34 = arith.constant 0 : index
    %c2_35 = arith.constant 2 : index
    %c0_36 = arith.constant 0 : index
    %c0_37 = arith.constant 0 : index
    %42 = vector.load %arg3[%c0_34, %c2_35, %c0_36, %c0_37] : memref<1x4x2x128xf32, #tpu.memory_space<vmem>>, vector<1x1x2x128xf32>
    %43 = vector.shape_cast %42 : vector<1x1x2x128xf32> to vector<2x128xf32>
    %44 = arith.mulf %43, %29 : vector<2x128xf32>
    %c0_38 = arith.constant 0 : index
    %c2_39 = arith.constant 2 : index
    %c0_40 = arith.constant 0 : index
    %c0_41 = arith.constant 0 : index
    %45 = vector.load %arg4[%c0_38, %c2_39, %c0_40, %c0_41] : memref<1x4x2x128xf32, #tpu.memory_space<vmem>>, vector<1x1x2x128xf32>
    %46 = vector.shape_cast %45 : vector<1x1x2x128xf32> to vector<2x128xf32>
    %47 = vector.shape_cast %44 : vector<2x128xf32> to vector<1x1x2x128xf32>
    tpu.vector_store %arg4[%c0_38, %c2_39, %c0_40, %c0_41], %47 {strides = array<i32>} : memref<1x4x2x128xf32, #tpu.memory_space<vmem>>, vector<1x1x2x128xf32>,
    %c0_42 = arith.constant 0 : index
    %c3_43 = arith.constant 3 : index
    %c0_44 = arith.constant 0 : index
    %c0_45 = arith.constant 0 : index
    %48 = vector.load %arg3[%c0_42, %c3_43, %c0_44, %c0_45] : memref<1x4x2x128xf32, #tpu.memory_space<vmem>>, vector<1x1x2x128xf32>
    %49 = vector.shape_cast %48 : vector<1x1x2x128xf32> to vector<2x128xf32>
    %50 = arith.mulf %49, %29 : vector<2x128xf32>
    %c0_46 = arith.constant 0 : index
    %c3_47 = arith.constant 3 : index
    %c0_48 = arith.constant 0 : index
    %c0_49 = arith.constant 0 : index
    %51 = vector.load %arg4[%c0_46, %c3_47, %c0_48, %c0_49] : memref<1x4x2x128xf32, #tpu.memory_space<vmem>>, vector<1x1x2x128xf32>
    %52 = vector.shape_cast %51 : vector<1x1x2x128xf32> to vector<2x128xf32>
    %53 = vector.shape_cast %50 : vector<2x128xf32> to vector<1x1x2x128xf32>
    tpu.vector_store %arg4[%c0_46, %c3_47, %c0_48, %c0_49], %53 {strides = array<i32>} : memref<1x4x2x128xf32, #tpu.memory_space<vmem>>, vector<1x1x2x128xf32>,
    return
  }
  func.func @transform_0(%arg0: i32, %arg1: i32) -> i32 {
    %c0_i32 = arith.constant 0 : i32
    %c0_i32_0 = arith.constant 0 : i32
    return %c0_i32 : i32
  }
  func.func @transform_1(%arg0: i32, %arg1: i32) -> (i32, i32, i32, i32) {
    %c0_i32 = arith.constant 0 : i32
    %c0_i32_0 = arith.constant 0 : i32
    %c0_i32_1 = arith.constant 0 : i32
    return %arg0, %c0_i32, %arg1, %c0_i32_0 : i32, i32, i32, i32
  }
  func.func @transform_2(%arg0: i32, %arg1: i32) -> (i32, i32, i32, i32) {
    %c0_i32 = arith.constant 0 : i32
    %c0_i32_0 = arith.constant 0 : i32
    %c0_i32_1 = arith.constant 0 : i32
    return %arg0, %c0_i32, %arg1, %c0_i32_0 : i32, i32, i32, i32
  }
}

</mosaic_0001>

<bundles_post_ra>
// kernel: tpu_custom_call.1
= control target key start
LH: loop header
LB: loop body
LE: loop exit
PB: predicated region body
PF: predicated region fallthrough
CT: control target
= control target key end

     0   :  { %7 = vsyncpa [#allocation5], 0  ;;  %s824_s0 = inlined_call_operand.hbm [shape: f32[4], index: 0, kind: input, shape index: {}]   ;;  %s825_s1 = inlined_call_operand.hbm [shape: f32[2,4,2,128], index: 1, kind: input, shape index: {}]   ;;  %s826_s2 = inlined_call_operand.hbm [shape: f32[2,4,2,128], index: 2, kind: output, shape index: {}]  }
   0x1   :  { %8 = vsyncpa [#allocation3], 0 }
   0x2   :  { %10 = vsyncpa [#allocation3 + $0x1], 0 }
   0x3   :  { %11 = vsyncpa [#allocation4], 0 }
   0x4   :  { %13 = vsyncpa [#allocation4 + $0x1], 0  ;;  %s610_s9 = smov 0   ;;  %s612_s10 = smov 0  }
   0x5   :  { %s614_s11 = smov 0   ;;  %s616_s12 = smov 0  }
   0x6   :  { %s618_s13 = smov 0   ;;  %s620_s14 = smov 0  }
   0x7 LB: > { %s345_s15 = sadd.s32 4294967295, %s586_s14   ;;  %s346_s16 = sadd.s32 4294967294, %s586_s14   ;;  %s586_s14 = sphi %s620_s14, %s19_s14   ;;  %s582_s13 = sphi %s618_s13, %s846_s13   ;;  %s578_s12 = sphi %s616_s12, %s845_s12   ;;  %s574_s11 = sphi %s614_s11, %s844_s11   ;;  %s570_s10 = sphi %s612_s10, %s843_s10   ;;  %s566_s9 = sphi %s610_s9, %s842_s9  }
   0x8   : > { %s61_s17 = sadd.s32 1, %s574_s11  ;;  %p68_p0 = scmp.ne.s32.totalorder %s574_s11, %s570_s10 }
   0x9   : > { %p69_p1 = scmp.eq.s32.totalorder %s586_s14, 0  ;;  %p74_p2 = scmp.ne.s32.totalorder %s570_s10, %s566_s9 }
   0xa   : > { %p648_p3 = scmp.eq.s32.totalorder %s345_s15, 0  ;;  %p100_p4 = scmp.eq.s32.totalorder %s345_s15, 1 }
   0xb   : > { %p70_p5 = por %p69_p1, %p68_p0  ;;  %p106_p6 = scmp.eq.s32.totalorder %s346_s16, 1 }
   0xc   : > { %s831_s18 = scalar_select %p648_p3, 1, 0 }
   0xd   : > { %p654_p7 = por %p648_p3, %p74_p2  ;;  %p658_p8 = por %p100_p4, %p68_p0 }
   0xe   : > { %p662_p9 = por %p106_p6, %p74_p2  ;;  %p347_p10 = scmp.ge.s32.totalorder %s586_s14, 1 }
   0xf   : > { %s832_s19 = scalar_select %p654_p7, 1, 0 }
  0x10   : > { %s833_s20 = scalar_select %p658_p8, 1, 0 }
  0x11   : > { %s834_s21 = scalar_select %p662_p9, 1, 0 }
  0x12   : > { %p113_p11 = scmp.lt.s32.totalorder %s586_s14, 3  ;;  %p397_p1 = scmp.lt.s32.totalorder %s586_s14, 2 }
  0x13   : > { %s135_s23 = sand.u32 1, %s574_s11   ;;  %s31_s25 = sadd.s32 1, %s582_s13 }
  0x14   : > { %p669_p13 = pnand %p347_p10, %p113_p11  ;;  %p677_p0 = pnand %p397_p1, %p70_p5 }
  0x15   : > { %s350_s26 = sshll.u32 %s135_s23, 3  ;;  %p33_p4 = scmp.ge.s32.totalorder %s31_s25, 2 }
  0x16   : > { %p384_p7 = pneg %p669_p13  ;;  %s457_s29 = scalar_lea.hbm %s824_s0, 16 }
  0x17   : > { %p458_p6 = scmp.ne.s32.totalorder %s824_s0, %s457_s29  ;;  %p464_p5 = scmp.lt.u32.totalorder %s457_s29, %s824_s0 }
  0x18   : > { %p385_p2 = pnand %p384_p7, %p648_p3 }
  0x1a   : > { %p459_p10 = pneg %p385_p2 }
  0x1c   : > { %p460_p11 = pnand %p459_p10, %p458_p6 }
  0x1e   : > { %p461_p12 = pneg %p460_p11 }
  0x20   : > { %p466_p1 = pnand %p464_p5, %p461_p12 }
  0x22   : > { %469 = shalt.err (!%p466_p1)
}
  0x23   : > { %s588_s6 = smov [#allocation2]   ;;  %s848_s25 = smov (%p33_p4, %s31_s25), 0 }
  0x24   : > { %387 = dma.hbm_to_smem (!%p385_p2), %s824_s0, 16, %s588_s6, [#allocation5]  }
  0x25   : > { %s374_s15 = sshll.u32 %s582_s13, 7  ;;  %s56_s16 = ssub.s32 %s582_s13, %s848_s25 }
  0x26   : > { %s704_s29 = scalar_lea.hbm %s825_s1, %s374_s15  ;;  %p59_p7 = scmp.eq.s32.totalorder %s56_s16, 0 }
  0x27   : > { %s139_s30 = scalar_lea.vmem [#allocation6], %s350_s26  ;;  %s713_s5 = scalar_lea.sflag [#allocation3], %s135_s23 }
  0x28   : > { %s147_s3 = sshll.u32 %s139_s30, 4  ;;  %s470_s6 = scalar_lea.hbm %s704_s29, 128  ;;  %s706_s3 = int_to_ptr.vmem [resolvable:$true] %s147_s3 }
  0x29   : > { %s711_s4 = scalar_select %p59_p7, %s574_s11, %s61_s17  }
  0x2a   : > { %p471_p12 = scmp.ne.s32.totalorder %s704_s29, %s470_s6  ;;  %p472_p2 = pneg %p677_p0 }
  0x2b   : > { %s475_s26 = scalar_lea.hbm %s825_s1, 256  ;;  %p476_p10 = scmp.lt.u32.totalorder %s704_s29, %s825_s1 }
  0x2c   : > { %p473_p4 = pnand %p472_p2, %p471_p12  ;;  %p477_p11 = scmp.lt.u32.totalorder %s475_s26, %s470_s6 }
  0x2d   : > { %p479_p1 = scmp.lt.u32.totalorder %s470_s6, %s704_s29 }
  0x2e   : > { %p474_p6 = pneg %p473_p4  ;;  %p478_p5 = por %p477_p11, %p476_p10 }
  0x30   : > { %p480_p7 = por %p479_p1, %p478_p5 }
  0x32   : > { %p481_p9 = pnand %p480_p7, %p474_p6 }
  0x34   : > { %484 = shalt.err (!%p481_p9)
}
  0x35   : > { %s485_s17 = scalar_lea.vmem %s706_s3, 128  ;;  %s589_s23 = smov [#allocation6]  }
  0x36   : > { %p486_p12 = scmp.ne.s32.totalorder %s706_s3, %s485_s17  ;;  %s490_s27 = sshll.u32 %s589_s23, 4  ;;  %s491_s27 = int_to_ptr.vmem [resolvable:$false] %s490_s27 }
  0x37   : > { %s492_s28 = scalar_lea.vmem %s491_s27, 256  ;;  %p493_p3 = scmp.lt.s32.totalorder %s706_s3, %s491_s27 }
  0x38   : > { %p488_p4 = pnand %p486_p12, %p472_p2  ;;  %p494_p10 = scmp.lt.s32.totalorder %s492_s28, %s485_s17 }
  0x3a   : > { %p489_p8 = pneg %p488_p4  ;;  %p495_p11 = por %p494_p10, %p493_p3 }
  0x3c   : > { %p496_p5 = pnand %p495_p11, %p489_p8 }
  0x3e   : > { %499 = shalt.err (!%p496_p5)
}
  0x3f   : > { %s590_s30 = smov 32   ;;  %s591_s6 = smov 2  }
  0x40   : > { %391 = dma.hbm_to_vmem [thread:$0]  (!%p677_p0), %s704_s29, 128, %s706_s3, %s713_s5, %s590_s30, %s590_s30, %s591_s6  }
  0x41   : > { %159 = sbr.rel (%p669_p13) target bundleno = 140 (0x8c), region = 28  ;;  %p837_p9 = scmp.ne.s32.totalorder (!%p669_p13), %s831_s18, 0 }
  0x48   : > { %553 = dma.done.wait (%p837_p9), [#allocation5], 16  }
  0x49   : > { %555 = vsyncadd (%p837_p9), [#allocation5], 4294967280  ;;  %s748_s7 = sand.u32 1, %s570_s10   ;;  %p838_p3 = scmp.ne.s32.totalorder %s832_s19, 0 }
  0x4a   : > { %s355_s8 = sshll.u32 %s748_s7, 3  ;;  %s166_s26 = scalar_lea.sflag [#allocation3], %s748_s7 }
  0x4b   : > { %s754_s24 = scalar_lea.vmem [#allocation6], %s355_s8 }
  0x4c   : > { %557 = dma.done.wait (%p838_p3), %s166_s26, 128  }
  0x4d   : > { %559 = vsyncadd (%p838_p3), %s166_s26, 4294967168 }
  0x4e   : > { %174 = sfence }
  0x4f   : > { %s192_s18 = sld [smem:[#allocation2]]  ;;  %s358_s22 = sld [smem:[#allocation2 + $0x1]]  ;;  %v191_v0 = vld [vmem:[%s754_s24] sm:$0x3]  ;;  %v357_v1 = vld [vmem:[%s754_s24 + $0x2] sm:$0x3] }
  0x50   : > { %s360_s29 = sld [smem:[#allocation2 + $0x2]]  ;;  %s362_s3 = sld [smem:[#allocation2 + $0x3]]  ;;  %v359_v3 = vld [vmem:[%s754_s24 + $0x4] sm:$0x3]  ;;  %v361_v6 = vld [vmem:[%s754_s24 + $0x6] sm:$0x3] }
  0x51   : > { %s190_s19 = scalar_lea.vmem [#allocation7], %s355_s8  ;;  %s375_s15 = sshll.u32 %s578_s12, 7  ;;  %v363_v19 = vld [vmem:[%s754_s24 + $0x2] sm:$0x3]  ;;  %v365_v20 = vld [vmem:[%s754_s24 + $0x4] sm:$0x3] }
  0x52   : > { %s248_s5 = sshll.u32 %s190_s19, 4  ;;  %v367_v21 = vld [vmem:[%s754_s24 + $0x6] sm:$0x3]  ;;  %s775_s23 = scalar_lea.hbm %s826_s2, %s375_s15  ;;  %s770_s5 = int_to_ptr.vmem [resolvable:$true] %s248_s5 }
  0x53   : > { %s234_s12 = scalar_lea.sflag [#allocation4], %s748_s7  ;;  %s500_s27 = scalar_lea.vmem %s770_s5, 128 }
  0x54   : > { %p501_p8 = scmp.ne.s32.totalorder %s770_s5, %s500_s27  ;;  %p839_p13 = scmp.ne.s32.totalorder %s833_s20, 0 }
  0x55   : > { %v193_v2 = vstv %s192_s18  ;;  %v198_v5 = vstv %s358_s22  ;;  %s592_s28 = smov [#allocation7]  }
  0x56   : > { %v194_v4 = vmul.f32 %v193_v2, %v191_v0  ;;  %v199_v7 = vmul.f32 %v357_v1, %v198_v5  ;;  %v204_v8 = vstv %s360_s29  ;;  %v210_v9 = vstv %s362_s3  ;;  %p502_p0 = pnand %p501_p8, %p839_p13  ;;  %s504_s30 = sshll.u32 %s592_s28, 4  ;;  %s505_s30 = int_to_ptr.vmem [resolvable:$false] %s504_s30 }
  0x57   : > { %v205_v10 = vmul.f32 %v359_v3, %v204_v8  ;;  %v211_v12 = vmul.f32 %v361_v6, %v210_v9  ;;  %s506_s6 = scalar_lea.vmem %s505_s30, 256  ;;  %p507_p6 = scmp.lt.s32.totalorder %s770_s5, %s505_s30 }
  0x58   : > { %v200_v11 = vadd.f32 %v199_v7, %v194_v4  ;;  %p503_p2 = pneg %p502_p0  ;;  %p508_p1 = scmp.lt.s32.totalorder %s506_s6, %s500_s27 }
  0x5a   : > { %v206_v13 = vadd.f32 %v205_v10, %v200_v11  ;;  %p509_p7 = por %p508_p1, %p507_p6 }
  0x5c   : > { %v212_v14 = vadd.f32 %v211_v12, %v206_v13  ;;  %p510_p12 = pnand %p509_p7, %p503_p2 }
  0x5e   : > { %v213_v15 = vsub.f32 0.0, %v212_v14 }
  0x60   : > { %v214_v16 = vmul.f32 1.442695, %v213_v15 }
  0x62   : > { %453 = vpow2.f32 %v214_v16 }
  0x6c   : > { %v454_v17 = vpop.eup %453 }
  0x6d   : > { %v216_v18 = vadd.f32 1.0, %v454_v17 }
  0x6f   : > { %455 = vrcp.f32 %v216_v18 }
  0x79   : > { %v456_v22 = vpop.eup %455 }
  0x7a   : > { %v219_v23 = vmul.f32 %v456_v22, %v191_v0  ;;  %v222_v24 = vmul.f32 %v456_v22, %v363_v19  ;;  %v226_v25 = vmul.f32 %v456_v22, %v365_v20  ;;  %v230_v26 = vmul.f32 %v456_v22, %v367_v21 }
  0x7c   : > { %220 = vst [vmem:[%s190_s19] sm:$0x3] %v219_v23  ;;  %364 = vst [vmem:[%s190_s19 + $0x2] sm:$0x3] %v222_v24 }
  0x7d   : > { %366 = vst [vmem:[%s190_s19 + $0x4] sm:$0x3] %v226_v25  ;;  %368 = vst [vmem:[%s190_s19 + $0x6] sm:$0x3] %v230_v26 }
  0x7e   : > { %513 = shalt.err (!%p510_p12)
}
  0x7f   : > { %s514_s8 = scalar_lea.hbm %s775_s23, 128  ;;  %s518_s18 = scalar_lea.hbm %s826_s2, 256 }
  0x80   : > { %p515_p4 = scmp.ne.s32.totalorder %s775_s23, %s514_s8  ;;  %p519_p5 = scmp.lt.u32.totalorder %s775_s23, %s826_s2 }
  0x81   : > { %p520_p9 = scmp.lt.u32.totalorder %s518_s18, %s514_s8  ;;  %p522_p8 = scmp.lt.u32.totalorder %s514_s8, %s775_s23 }
  0x82   : > { %p516_p10 = pnand %p515_p4, %p839_p13 }
  0x83   : > { %p521_p3 = por %p520_p9, %p519_p5 }
  0x84   : > { %p517_p11 = pneg %p516_p10 }
  0x85   : > { %p523_p0 = por %p522_p8, %p521_p3 }
  0x87   : > { %p524_p2 = pnand %p523_p0, %p517_p11 }
  0x89   : > { %527 = shalt.err (!%p524_p2)
}
  0x8a   : > { %s593_s3 = smov 32   ;;  %s594_s19 = smov 2  }
  0x8b   : > { %382 = dma.vmem_to_hbm [thread:$0]  (%p839_p13), %s770_s5, 128, %s775_s23, %s234_s12, %s593_s3, %s593_s3, %s594_s19  }
  0x8c PF: > { %s263_s15 = sand.u32 1, %s566_s9   ;;  %p840_p6 = scmp.ne.s32.totalorder %s834_s21, 0 }
  0x8d   : > { %p841_p1 = scmp.ge.s32.totalorder %s586_s14, 2  ;;  %s264_s16 = scalar_lea.sflag [#allocation4], %s263_s15 }
  0x8f   : > { %p393_p7 = pnand %p841_p1, %p840_p6 }
  0x91   : > { %561 = dma.done.wait (!%p393_p7), %s264_s16, 128  }
  0x92   : > { %563 = vsyncadd (!%p393_p7), %s264_s16, 4294967168  ;;  %s19_s14 = sadd.s32 1, %s586_s14   ;;  %s842_s9 = smov %s570_s10 }
  0x93   : > { %p16_p12 = scmp.ge.s32.totalorder %s19_s14, 4   ;;  %s843_s10 = smov %s574_s11 }
  0x94   : > { %s844_s11 = smov %s711_s4  ;;  %s845_s12 = smov %s582_s13 }
  0x95   : > { %s846_s13 = smov %s848_s25  ;;  %18 = sbr.rel (!%p16_p12) target bundleno = 7 (0x7), region = 84 }
  0x9c   :  { %269 = vsyncpa [#allocation3], 1 }
  0x9d   :  { %271 = vsyncpa [#allocation3 + $0x1], 1 }
  0x9e   :  { %272 = vsyncpa [#allocation4], 1 }
  0x9f   :  { %274 = vsyncpa [#allocation4 + $0x1], 1 }
  0xa0   :  { %275 = vsyncpa [#allocation5], 1 }
  0xa1   :  { %277 = vsyncpa [#allocation5 + $0x1], 1 }

</bundles_post_ra>
